<compile_context>
chip_gen: v7x
topology: tpu7x:2x2x1
jax: 0.10.0
libtpu: 0.0.40
codegen_flags: <defaults>
</compile_context>

<pallas_src>
import functools

import jax
import jax.numpy as jnp
from jax import lax
from jax.experimental import pallas as pl
from jax.experimental.pallas import tpu as pltpu


def _round_up(n, m):
    return ((n + m - 1) // m) * m


def _dueling_fullynet_kernel(x_ref, w_ref, b_ref, out_a_ref, out_v_ref,
                             *, S, C, A, net_type):
    # x_ref:     (tb, S)        bf16
    # w_ref:     (S + 2C, C)    bf16   [w1 ; w2 ; (wa|wv, zero padded)]
    # b_ref:     (3, C)         f32    [b1 ; b2 ; (ba|bv, zero padded)]
    # out_a_ref: (tb, A)        bf16   activated action head
    # out_v_ref: (tb, 1)        bf16   raw value head
    x = x_ref[...]

    w1 = w_ref[0:S, :]                       # (S, C)
    w2 = w_ref[S:S + C, :]                   # (C, C)
    wh = w_ref[S + C:S + 2 * C, :]           # (C, C): cols [0,A)=wa, col A=wv
    b1 = b_ref[0:1, :]
    b2 = b_ref[1:2, :]
    bh = b_ref[2:3, :]

    # fc1 + ReLU
    h1 = jnp.dot(x, w1, preferred_element_type=jnp.float32) + b1
    h1 = jnp.maximum(h1, 0.0).astype(jnp.bfloat16)

    # fc2 + ReLU
    h2 = jnp.dot(h1, w2, preferred_element_type=jnp.float32) + b2
    h2 = jnp.maximum(h2, 0.0).astype(jnp.bfloat16)

    # Fused heads: lanes [0, A) = action logits, lane A = value, rest zero pad.
    heads = jnp.dot(h2, wh, preferred_element_type=jnp.float32) + bh

    if net_type == "value":                  # nn.ReLU()
        action = jnp.maximum(heads[:, :A], 0.0)
    else:                                    # nn.Softmax(dim=-1)
        # Full padded-lane-width softmax with an iota mask (pad lanes excluded).
        lane = lax.broadcasted_iota(jnp.int32, heads.shape, 1)
        valid = lane < A
        logits = jnp.where(valid, heads, -jnp.inf)
        m = jnp.max(logits, axis=-1, keepdims=True)
        e = jnp.where(valid, jnp.exp(heads - m), 0.0)
        denom = jnp.sum(e, axis=-1, keepdims=True)
        # NOTE: approx reciprocal -> probabilities sum to 1 only up to EUP rcp
        # accuracy (fine at bf16 output precision).
        action = (e * pl.reciprocal(denom, approx=True))[:, :A]

    out_a_ref[...] = action.astype(out_a_ref.dtype)
    out_v_ref[...] = heads[:, A:A + 1].astype(out_v_ref.dtype)


def _pick_batch_tile(B, max_tile):
    """Rows per grid step.  For B >= 16 keep >= 2 (preferably even) grid steps
    so the single 'parallel' axis splits across v7x's two TensorCores."""
    if B < 16:
        return _round_up(B, 8)
    tile = min(max_tile, _round_up(-(-B // 2), 8))
    steps = -(-B // tile)
    if steps > 2 and steps % 2:              # prefer an even step count
        tile = min(tile, _round_up(-(-B // (steps + 1)), 8))
    return tile


def dueling_fullynet_forward(x, packed, net_type, *, tile_b=2048):
    """x: (B, state_space) float.  Returns (action (B, A), value (B, 1)), bf16."""
    if net_type not in ("value", "policy"):
        raise ValueError("Undefined net type")
    B, S = x.shape
    A, C = packed["A"], packed["C"]
    assert S == packed["S"]
    w_slab, b_slab = packed["w_slab"], packed["b_slab"]

    tile = _pick_batch_tile(B, tile_b)
    grid = -(-B // tile)
    B_pad = grid * tile

    x_bf = x.astype(jnp.bfloat16)
    if B_pad != B:
        x_bf = jnp.pad(x_bf, ((0, B_pad - B), (0, 0)))

    kernel = functools.partial(_dueling_fullynet_kernel,
                               S=S, C=C, A=A, net_type=net_type)

    flops = 2 * B_pad * (S * C + 2 * C * C)
    transcendentals = B_pad * C if net_type == "policy" else 0
    bytes_accessed = (x_bf.size * 2 + w_slab.size * 2 + b_slab.size * 4
                      + B_pad * (A + 1) * 2)

    action, value = pl.pallas_call(
        kernel,
        out_shape=(jax.ShapeDtypeStruct((B_pad, A), jnp.bfloat16),
                   jax.ShapeDtypeStruct((B_pad, 1), jnp.bfloat16)),
        grid=(grid,),
        in_specs=[
            pl.BlockSpec((tile, S), lambda i: (i, 0)),
            pl.BlockSpec(w_slab.shape, lambda i: (0, 0)),   # resident across grid
            pl.BlockSpec(b_slab.shape, lambda i: (0, 0)),
        ],
        out_specs=(
            pl.BlockSpec((tile, A), lambda i: (i, 0)),
            pl.BlockSpec((tile, 1), lambda i: (i, 0)),
        ),
        compiler_params=pltpu.CompilerParams(
            dimension_semantics=("parallel",)),
        cost_estimate=pl.CostEstimate(flops=flops,
                                      transcendentals=transcendentals,
                                      bytes_accessed=bytes_accessed),
    )(x_bf, w_slab, b_slab)

    if B_pad != B:
        action, value = action[:B], value[:B]
    return action, value


def init_params(key, state_space, action_space, hidden_size):
    """PyTorch nn.Linear default init: U(-1/sqrt(fan_in), +1/sqrt(fan_in)).
    Weights stored transposed: (in_features, out_features)."""
    def linear(k, fan_in, fan_out):
        kw, kb = jax.random.split(k)
        bound = 1.0 / jnp.sqrt(fan_in)
        w = jax.random.uniform(kw, (fan_in, fan_out), jnp.float32, -bound, bound)
        b = jax.random.uniform(kb, (1, fan_out), jnp.float32, -bound, bound)
        return w, b

    k1, k2, k3, k4 = jax.random.split(key, 4)
    w1, b1 = linear(k1, state_space, hidden_size)
    w2, b2 = linear(k2, hidden_size, hidden_size)
    wv, bv = linear(k3, hidden_size, 1)
    wa, ba = linear(k4, hidden_size, action_space)
    return dict(w1=w1, b1=b1, w2=w2, b2=b2, wa=wa, ba=ba, wv=wv, bv=bv)


def pack_params(p, state_space, action_space, hidden_size):
    """Pack the 8 params into one lane-dense bf16 weight slab + one f32 bias slab."""
    S, A, H = state_space, action_space, hidden_size
    C = _round_up(max(H, A + 1), 128)       # lane-dense common column width

    def pad_cols(m):
        return jnp.pad(m, ((0, 0), (0, C - m.shape[1])))

    w1 = pad_cols(p["w1"])                                        # (S, C)
    w2 = jnp.pad(p["w2"], ((0, C - H), (0, C - H)))               # (C, C)
    wh = jnp.zeros((C, C), jnp.float32)
    wh = wh.at[:H, :A].set(p["wa"]).at[:H, A:A + 1].set(p["wv"])  # (C, C)
    w_slab = jnp.concatenate([w1, w2, wh], axis=0).astype(jnp.bfloat16)

    b1 = pad_cols(p["b1"])
    b2 = pad_cols(p["b2"])
    bh = jnp.zeros((1, C), jnp.float32)
    bh = bh.at[:, :A].set(p["ba"]).at[:, A:A + 1].set(p["bv"])
    b_slab = jnp.concatenate([b1, b2, bh], axis=0)                # (3, C) f32

    return dict(w_slab=w_slab, b_slab=b_slab, S=S, A=A, H=H, C=C)


def _reference_forward(x, p, net_type):
    """Reference mirroring the kernel's bf16 operand rounding (f32 math, f32 bias)."""
    r = lambda a: a.astype(jnp.bfloat16).astype(jnp.float32)
    xb = r(x)
    h1 = r(jnp.maximum(xb @ r(p["w1"]) + p["b1"], 0.0))
    h2 = r(jnp.maximum(h1 @ r(p["w2"]) + p["b2"], 0.0))
    logits = h2 @ r(p["wa"]) + p["ba"]
    value = h2 @ r(p["wv"]) + p["bv"]
    if net_type == "value":
        action = jnp.maximum(logits, 0.0)
    else:
        action = jax.nn.softmax(logits, axis=-1)
    return action, value


if __name__ == "__main__":
    state_space, action_space, hidden_size = 16, 8, 32

    key = jax.random.PRNGKey(0)
    k_params, k_x = jax.random.split(key)
    raw = init_params(k_params, state_space, action_space, hidden_size)
    packed = pack_params(raw, state_space, action_space, hidden_size)

    ok = True
    # batch=2   -> single padded tile (grid length 1)
    # batch=512 with tile_b=128 -> 4-step even "parallel" grid (megacore path)
    for batch, tile_b in ((2, 2048), (512, 128)):
        x = jax.random.normal(jax.random.fold_in(k_x, batch),
                              (batch, state_space), jnp.float32)
        for net_type in ("policy", "value"):
            action, value = dueling_fullynet_forward(x, packed, net_type,
                                                     tile_b=tile_b)
            jax.block_until_ready((action, value))
            ref_action, ref_value = _reference_forward(x, raw, net_type)
            ok &= bool(jnp.allclose(action.astype(jnp.float32), ref_action,
                                    atol=2e-2, rtol=2e-2))
            ok &= bool(jnp.allclose(value.astype(jnp.float32), ref_value,
                                    atol=2e-2, rtol=2e-2))
            ok &= action.shape == (batch, action_space)
            ok &= value.shape == (batch, 1)

    if ok:
        print("KERNEL_OK")
</pallas_src>

<mosaic_0001>
module attributes {stable_mosaic.version = 11 : i64} {
  func.func @_dueling_fullynet_kernel(%arg0: i32, %arg1: memref<8x16xbf16, #tpu.memory_space<vmem>>, %arg2: memref<272x128xbf16, #tpu.memory_space<vmem>>, %arg3: memref<3x128xf32, #tpu.memory_space<vmem>>, %arg4: memref<8x8xbf16, #tpu.memory_space<vmem>>, %arg5: memref<8x1xbf16, #tpu.memory_space<vmem>>) attributes {dimension_semantics = [#tpu.dimension_semantics<parallel>], iteration_bounds = array<i64: 1>, scalar_prefetch = 0 : i64, scratch_operands = 0 : i64, tpu.core_type = #tpu.core_type<tc>, window_params = [{transform_indices = @transform_0, window_bounds = array<i64: 8, 16>}, {pipeline_mode = #tpu.pipeline_mode<synchronous>, transform_indices = @transform_1, window_bounds = array<i64: 272, 128>}, {pipeline_mode = #tpu.pipeline_mode<synchronous>, transform_indices = @transform_2, window_bounds = array<i64: 3, 128>}, {transform_indices = @transform_3, window_bounds = array<i64: 8, 8>}, {transform_indices = @transform_4, window_bounds = array<i64: 8, 1>}]} {
    %c0 = arith.constant 0 : index
    %c0_0 = arith.constant 0 : index
    %0 = vector.load %arg1[%c0, %c0_0] : memref<8x16xbf16, #tpu.memory_space<vmem>>, vector<8x16xbf16>
    %c0_1 = arith.constant 0 : index
    %c0_2 = arith.constant 0 : index
    %1 = vector.load %arg2[%c0_1, %c0_2] : memref<272x128xbf16, #tpu.memory_space<vmem>>, vector<16x128xbf16>
    %c16 = arith.constant 16 : index
    %c0_3 = arith.constant 0 : index
    %2 = vector.load %arg2[%c16, %c0_3] : memref<272x128xbf16, #tpu.memory_space<vmem>>, vector<128x128xbf16>
    %c144 = arith.constant 144 : index
    %c0_4 = arith.constant 0 : index
    %3 = vector.load %arg2[%c144, %c0_4] : memref<272x128xbf16, #tpu.memory_space<vmem>>, vector<128x128xbf16>
    %c0_5 = arith.constant 0 : index
    %c0_6 = arith.constant 0 : index
    %4 = vector.load %arg3[%c0_5, %c0_6] : memref<3x128xf32, #tpu.memory_space<vmem>>, vector<1x128xf32>
    %c1 = arith.constant 1 : index
    %c0_7 = arith.constant 0 : index
    %5 = vector.load %arg3[%c1, %c0_7] : memref<3x128xf32, #tpu.memory_space<vmem>>, vector<1x128xf32>
    %c2 = arith.constant 2 : index
    %c0_8 = arith.constant 0 : index
    %6 = vector.load %arg3[%c2, %c0_8] : memref<3x128xf32, #tpu.memory_space<vmem>>, vector<1x128xf32>
    %cst = arith.constant dense<0.000000e+00> : vector<8x128xf32>
    %7 = tpu.matmul %0, %1, %cst {dimension_numbers = #tpu.dot_dimension_numbers<[1], [0], [0], [1], [0, 0, 1, 1], [], []>} : vector<8x16xbf16>, vector<16x128xbf16>, vector<8x128xf32> -> vector<8x128xf32>
    %8 = vector.broadcast %4 : vector<1x128xf32> to vector<8x128xf32>
    %9 = arith.addf %7, %8 : vector<8x128xf32>
    %cst_9 = arith.constant 0.000000e+00 : f32
    %10 = vector.broadcast %cst_9 : f32 to vector<8x128xf32>
    %11 = arith.maximumf %9, %10 : vector<8x128xf32>
    %12 = arith.truncf %11 : vector<8x128xf32> to vector<8x128xbf16>
    %cst_10 = arith.constant dense<0.000000e+00> : vector<8x128xf32>
    %13 = tpu.matmul %12, %2, %cst_10 {dimension_numbers = #tpu.dot_dimension_numbers<[1], [0], [0], [1], [0, 0, 1, 1], [], []>} : vector<8x128xbf16>, vector<128x128xbf16>, vector<8x128xf32> -> vector<8x128xf32>
    %14 = vector.broadcast %5 : vector<1x128xf32> to vector<8x128xf32>
    %15 = arith.addf %13, %14 : vector<8x128xf32>
    %cst_11 = arith.constant 0.000000e+00 : f32
    %16 = vector.broadcast %cst_11 : f32 to vector<8x128xf32>
    %17 = arith.maximumf %15, %16 : vector<8x128xf32>
    %18 = arith.truncf %17 : vector<8x128xf32> to vector<8x128xbf16>
    %cst_12 = arith.constant dense<0.000000e+00> : vector<8x128xf32>
    %19 = tpu.matmul %18, %3, %cst_12 {dimension_numbers = #tpu.dot_dimension_numbers<[1], [0], [0], [1], [0, 0, 1, 1], [], []>} : vector<8x128xbf16>, vector<128x128xbf16>, vector<8x128xf32> -> vector<8x128xf32>
    %20 = vector.broadcast %6 : vector<1x128xf32> to vector<8x128xf32>
    %21 = arith.addf %19, %20 : vector<8x128xf32>
    %22 = tpu.iota {dimensions = array<i32: 1>} : vector<8x128xi32>
    %c8_i32 = arith.constant 8 : i32
    %23 = vector.broadcast %c8_i32 : i32 to vector<8x128xi32>
    %24 = arith.cmpi slt, %22, %23 : vector<8x128xi32>
    %cst_13 = arith.constant 0xFF800000 : f32
    %25 = vector.broadcast %cst_13 : f32 to vector<8x128xf32>
    %26 = arith.select %24, %21, %25 : vector<8x128xi1>, vector<8x128xf32>
    %cst_14 = arith.constant dense<0xFF800000> : vector<8xf32>
    %27 = vector.multi_reduction <maximumf>, %26, %cst_14 [1] : vector<8x128xf32> to vector<8xf32>
    %28 = vector.shape_cast %27 : vector<8xf32> to vector<8x1xf32>
    %29 = vector.broadcast %28 : vector<8x1xf32> to vector<8x128xf32>
    %30 = arith.subf %21, %29 : vector<8x128xf32>
    %31 = math.exp %30 : vector<8x128xf32>
    %cst_15 = arith.constant 0.000000e+00 : f32
    %32 = vector.broadcast %cst_15 : f32 to vector<8x128xf32>
    %33 = arith.select %24, %31, %32 : vector<8x128xi1>, vector<8x128xf32>
    %cst_16 = arith.constant dense<0.000000e+00> : vector<8xf32>
    %34 = vector.multi_reduction <add>, %33, %cst_16 [1] : vector<8x128xf32> to vector<8xf32>
    %35 = vector.shape_cast %34 : vector<8xf32> to vector<8x1xf32>
    %36 = tpu.reciprocal %35 {approx = true} : vector<8x1xf32> -> vector<8x1xf32>
    %37 = vector.broadcast %36 : vector<8x1xf32> to vector<8x128xf32>
    %38 = arith.mulf %33, %37 : vector<8x128xf32>
    %39 = vector.extract_strided_slice %38 {offsets = [0, 0], sizes = [8, 8], strides = [1, 1]} : vector<8x128xf32> to vector<8x8xf32>
    %40 = arith.truncf %39 : vector<8x8xf32> to vector<8x8xbf16>
    %c0_17 = arith.constant 0 : index
    %c0_18 = arith.constant 0 : index
    %41 = vector.load %arg4[%c0_17, %c0_18] : memref<8x8xbf16, #tpu.memory_space<vmem>>, vector<8x8xbf16>
    tpu.vector_store %arg4[%c0_17, %c0_18], %40 {strides = array<i32>} : memref<8x8xbf16, #tpu.memory_space<vmem>>, vector<8x8xbf16>,
    %42 = vector.extract_strided_slice %21 {offsets = [0, 8], sizes = [8, 1], strides = [1, 1]} : vector<8x128xf32> to vector<8x1xf32>
    %43 = arith.truncf %42 : vector<8x1xf32> to vector<8x1xbf16>
    %c0_19 = arith.constant 0 : index
    %c0_20 = arith.constant 0 : index
    %44 = vector.load %arg5[%c0_19, %c0_20] : memref<8x1xbf16, #tpu.memory_space<vmem>>, vector<8x1xbf16>
    tpu.vector_store %arg5[%c0_19, %c0_20], %43 {strides = array<i32>} : memref<8x1xbf16, #tpu.memory_space<vmem>>, vector<8x1xbf16>,
    return
  }
  func.func @transform_0(%arg0: i32) -> (i32, i32) {
    %c0_i32 = arith.constant 0 : i32
    %c0_i32_0 = arith.constant 0 : i32
    return %arg0, %c0_i32 : i32, i32
  }
  func.func @transform_1(%arg0: i32) -> (i32, i32) {
    %c0_i32 = arith.constant 0 : i32
    %c0_i32_0 = arith.constant 0 : i32
    %c0_i32_1 = arith.constant 0 : i32
    return %c0_i32, %c0_i32_0 : i32, i32
  }
  func.func @transform_2(%arg0: i32) -> (i32, i32) {
    %c0_i32 = arith.constant 0 : i32
    %c0_i32_0 = arith.constant 0 : i32
    %c0_i32_1 = arith.constant 0 : i32
    return %c0_i32, %c0_i32_0 : i32, i32
  }
  func.func @transform_3(%arg0: i32) -> (i32, i32) {
    %c0_i32 = arith.constant 0 : i32
    %c0_i32_0 = arith.constant 0 : i32
    return %arg0, %c0_i32 : i32, i32
  }
  func.func @transform_4(%arg0: i32) -> (i32, i32) {
    %c0_i32 = arith.constant 0 : i32
    %c0_i32_0 = arith.constant 0 : i32
    return %arg0, %c0_i32 : i32, i32
  }
}

</mosaic_0001>

<bundles_post_ra>
// kernel: tpu_custom_call.1
= control target key start
LH: loop header
LB: loop body
LE: loop exit
PB: predicated region body
PF: predicated region fallthrough
CT: control target
= control target key end

     0   :  { %10 = vsyncpa [#allocation3], 0  ;;  %s670_s0 = inlined_call_operand.hbm [shape: bf16[8,16], index: 0, kind: input, shape index: {}]   ;;  %s671_s1 = inlined_call_operand.hbm [shape: bf16[272,128], index: 1, kind: input, shape index: {}]   ;;  %s672_s2 = inlined_call_operand.vmem [shape: f32[3,128], index: 2, kind: input, shape index: {}]   ;;  %s673_s3 = inlined_call_operand.hbm [shape: bf16[8,8], index: 3, kind: output, shape index: {0}]   ;;  %s674_s4 = inlined_call_operand.vmem [shape: bf16[8,1], index: 4, kind: output, shape index: {1}]  }
   0x1   :  { %11 = vsyncpa [#allocation6], 0 }
   0x2   :  { %12 = vsyncpa [#allocation4], 0  ;;  %s560_s15 = smov [#allocation2]   ;;  %s561_s17 = smov [#allocation5]  }
   0x3   :  { %s19_s16 = sshll.u32 %s560_s15, 4  ;;  %s28_s18 = sshll.u32 %s561_s17, 4  ;;  %s20_s16 = int_to_ptr.vmem [resolvable:$true] %s19_s16  ;;  %s593_s18 = int_to_ptr.vmem [resolvable:$true] %s28_s18 }
   0x4   :  { %s488_s21 = scalar_lea.hbm %s670_s0, 64 }
   0x5   :  { %p489_p0 = scmp.ne.s32.totalorder %s670_s0, %s488_s21  ;;  %p492_p1 = scmp.lt.u32.totalorder %s488_s21, %s670_s0 }
   0x7   :  { %p494_p2 = pnand %p492_p1, %p489_p0 }
   0x9   :  { %497 = shalt.err (!%p494_p2)
}
   0xa   :  { %s498_s26 = scalar_lea.vmem %s20_s16, 64  ;;  %p503_p4 = scmp.lt.s32.totalorder %s20_s16, %s20_s16 }
   0xb   :  { %p499_p3 = scmp.ne.s32.totalorder %s20_s16, %s498_s26  ;;  %p504_p5 = scmp.lt.s32.totalorder %s498_s26, %s498_s26 }
   0xd   :  { %p505_p6 = por %p504_p5, %p503_p4 }
   0xf   :  { %p506_p7 = pnand %p505_p6, %p499_p3 }
  0x11   :  { %509 = shalt.err (!%p506_p7)
}
  0x12   :  { %22 = dma.hbm_to_vmem [thread:$0]  %s670_s0, 64, %s20_s16, [#allocation3]  }
  0x13   :  { %s510_s5 = scalar_lea.hbm %s671_s1, 2176 }
  0x14   :  { %p511_p8 = scmp.ne.s32.totalorder %s671_s1, %s510_s5  ;;  %p514_p9 = scmp.lt.u32.totalorder %s510_s5, %s671_s1 }
  0x16   :  { %p516_p10 = pnand %p514_p9, %p511_p8 }
  0x18   :  { %519 = shalt.err (!%p516_p10)
}
  0x19   :  { %s520_s10 = scalar_lea.vmem %s593_s18, 2176  ;;  %p525_p12 = scmp.lt.s32.totalorder %s593_s18, %s593_s18 }
  0x1a   :  { %p521_p11 = scmp.ne.s32.totalorder %s593_s18, %s520_s10  ;;  %p526_p13 = scmp.lt.s32.totalorder %s520_s10, %s520_s10 }
  0x1c   :  { %p527_p0 = por %p526_p13, %p525_p12 }
  0x1e   :  { %p528_p1 = pnand %p527_p0, %p521_p11 }
  0x20   :  { %531 = shalt.err (!%p528_p1)
}
  0x21   :  { %s562_s0 = smov 64   ;;  %s563_s11 = smov 4  }
  0x22   :  { %34 = dma.hbm_to_vmem [thread:$0]  %s671_s1, 2176, %s593_s18, [#allocation6], %s562_s0, %s562_s0, %s563_s11  }
  0x23   :  { %554 = dma.done.wait [#allocation3], 64  }
  0x24   :  { %555 = vsyncadd [#allocation3], 4294967232 }
  0x25   :  { %556 = dma.done.wait [#allocation6], 2176  }
  0x26   :  { %557 = vsyncadd [#allocation6], 4294965120  ;;  %v564_v0 = vmov 0.0   ;;  %vm565_vm0 = vmmov 0   ;;  %v467_v1 = vld [vmem:[#allocation5] sm:$0xff]   ;;  %vm92_vm1 = vcmask 130048   ;;  %v324_v35 = vlaneseq }
  0x27   :  { %413 = vmatprep.subr.bf16.mxu0 %v564_v0  ;;  %415 = vmatprep.mubr.msk.bf16.mxu0 %vm565_vm0, %v564_v0  ;;  %v44_v2 = vld [vmem:[#allocation2] sm:$0xf]  ;;  %v468_v3 = vld [vmem:[#allocation5 + $0x8] sm:$0xff]   ;;  %v469_v4 = vld [vmem:[#allocation5 + $0x10] sm:$0xff]   ;;  %s566_s19 = smov 120   ;;  %vm348_vm3 = vcmask 3072  }
  0x28   :  { %419 = vmatprep.subr.bf16.mxu1 %v564_v0  ;;  %435 = vmatprep.mubr.msk.bf16.mxu1 %vm565_vm0, %v564_v0  ;;  %v470_v5 = vld [vmem:[#allocation5 + $0x18] sm:$0xff]   ;;  %v471_v6 = vld [vmem:[#allocation5 + $0x20] sm:$0xff]   ;;  %v472_v7 = vld [vmem:[#allocation5 + $0x28] sm:$0xff]   ;;  %v325_v36 = vand.u32 127, %v324_v35  ;;  %vm339_vm4 = vcmask 60416  }
  0x29   :  { %414 = vmatpush3.bf16.msra.mxu0 %v467_v1  ;;  %420 = vmatpush3.bf16.msra.mxu1 %v468_v3  ;;  %v473_v8 = vld [vmem:[#allocation5 + $0x30] sm:$0xff]   ;;  %v474_v9 = vld [vmem:[#allocation5 + $0x38] sm:$0xff]   ;;  %v475_v10 = vld [vmem:[#allocation5 + $0x40] sm:$0xff]  }
  0x2a   :  { %439 = vmatprep.subr.bf16.mxu0 %v564_v0  ;;  %421 = vmatprep.subr.bf16.mxu1 %v564_v0  ;;  %v476_v11 = vld [vmem:[#allocation5 + $0x48] sm:$0xff]   ;;  %v477_v12 = vld [vmem:[#allocation5 + $0x50] sm:$0xff]   ;;  %v478_v13 = vld [vmem:[#allocation5 + $0x58] sm:$0xff]   ;;  %vm326_vm2 = vcmp.lt.s32.totalorder %v325_v36, 8 }
  0x2b   :  { %v479_v14 = vld [vmem:[#allocation5 + $0x60] sm:$0xff]   ;;  %v480_v15 = vld [vmem:[#allocation5 + $0x68] sm:$0xff]   ;;  %v481_v16 = vld [vmem:[#allocation5 + $0x70] sm:$0xff]  }
  0x2c   :  { %416 = vmatmul.mubr.msk.bf16.vlgmr.msra.gmra.mrb[0].mxu0 %vm92_vm1, %v44_v2  ;;  %v370_v17 = vld [vmem:[%s672_s2] ss:$0 sm:$0xff]  ;;  %v483_v26 = vld [vmem:[#allocation5 + $0x80] sm:$0xff]   ;;  %v373_v27 = vld [vmem:[%s672_s2 + $0x1] ss:$0 sm:$0xff] }
  0x2d   :  { %455 = vmatprep.mubr.msk.bf16.mxu0 %vm565_vm0, %v564_v0  ;;  %422 = vmatpush3.bf16.msra.mxu1 %v469_v4  ;;  %v482_v25 = vld [vmem:[#allocation5 + $0x78] sm:$0xff]  }
  0x2e   :  { %423 = vmatprep.subr.bf16.mxu1 %v564_v0  ;;  %440 = vmatpush3.bf16.msra.mxu0 %v476_v11  ;;  %v382_v37 = vld [vmem:[%s672_s2 + $0x2] ss:$0 sm:$0xff]  ;;  %s567_s2 = smov [#allocation7]  }
  0x2f   :  { %441 = vmatprep.subr.bf16.mxu0 %v564_v0  ;;  %s356_s22 = sshll.u32 %s567_s2, 4  ;;  %s357_s22 = int_to_ptr.vmem [resolvable:$true] %s356_s22 }
  0x30   :  { %s532_s23 = scalar_lea.vmem %s357_s22, 64  ;;  %p537_p3 = scmp.lt.s32.totalorder %s357_s22, %s357_s22 }
  0x31   :  { %424 = vmatpush3.bf16.msra.mxu1 %v470_v5  ;;  %p533_p2 = scmp.ne.s32.totalorder %s357_s22, %s532_s23  ;;  %p538_p4 = scmp.lt.s32.totalorder %s532_s23, %s532_s23 }
  0x32   :  { %425 = vmatprep.subr.bf16.mxu1 %v564_v0  ;;  %442 = vmatpush3.bf16.msra.mxu0 %v477_v12 }
  0x33   :  { %443 = vmatprep.subr.bf16.mxu0 %v564_v0  ;;  %p539_p5 = por %p538_p4, %p537_p3 }
  0x35   :  { %426 = vmatpush3.bf16.msra.mxu1 %v471_v6  ;;  %p540_p6 = pnand %p539_p5, %p533_p2 }
  0x36   :  { %427 = vmatprep.subr.bf16.mxu1 %v564_v0  ;;  %444 = vmatpush3.bf16.msra.mxu0 %v478_v13 }
  0x37   :  { %445 = vmatprep.subr.bf16.mxu0 %v564_v0 }
  0x39   :  { %428 = vmatpush3.bf16.msra.mxu1 %v472_v7 }
  0x3a   :  { %429 = vmatprep.subr.bf16.mxu1 %v564_v0  ;;  %446 = vmatpush3.bf16.msra.mxu0 %v479_v14 }
  0x3b   :  { %447 = vmatprep.subr.bf16.mxu0 %v564_v0 }
  0x3d   :  { %430 = vmatpush3.bf16.msra.mxu1 %v473_v8 }
  0x3e   :  { %431 = vmatprep.subr.bf16.mxu1 %v564_v0  ;;  %448 = vmatpush3.bf16.msra.mxu0 %v480_v15 }
  0x3f   :  { %449 = vmatprep.subr.bf16.mxu0 %v564_v0 }
  0x41   :  { %432 = vmatpush3.bf16.msra.mxu1 %v474_v9 }
  0x42   :  { %433 = vmatprep.subr.bf16.mxu1 %v564_v0  ;;  %450 = vmatpush3.bf16.msra.mxu0 %v481_v16 }
  0x43   :  { %451 = vmatprep.subr.bf16.mxu0 %v564_v0 }
  0x45   :  { %434 = vmatpush3.bf16.msra.mxu1 %v475_v10 }
  0x46   :  { %452 = vmatpush3.bf16.msra.mxu0 %v482_v25 }
  0x47   :  { %453 = vmatprep.subr.bf16.mxu0 %v564_v0 }
  0x4a   :  { %454 = vmatpush3.bf16.msra.mxu0 %v483_v26 }
  0xff   :  { %v130_v18 = vpop.f32.mrb[0].mxu0 }
 0x100   :  { %v131_v19 = vadd.f32 %v370_v17, %v130_v18  ;;  %v417_v20 = vpop.f32.mrb[1].mxu0 }
 0x101   :  { %v133_v21 = vpop.f32.mrb[2].mxu0 }
 0x102   :  { %v136_v22 = vmax.f32 %v131_v19, 0.0  ;;  %v418_v23 = vpop.f32.mrb[3].mxu0 }
 0x104   :  { %v137_v24 = vpack.c.bf16 %v136_v22, %v136_v22 }
 0x106   :  { %436 = vmatmul.mubr.bf16.vlgmr.msra.gmra.mrb[0].mxu1 %v137_v24 }
 0x1d9   :  { %v224_v28 = vpop.f32.mrb[0].mxu1 }
 0x1da   :  { %v225_v29 = vadd.f32 %v373_v27, %v224_v28  ;;  %v437_v30 = vpop.f32.mrb[1].mxu1 }
 0x1db   :  { %v227_v31 = vpop.f32.mrb[2].mxu1 }
 0x1dc   :  { %v230_v32 = vmax.f32 %v225_v29, 0.0  ;;  %v438_v33 = vpop.f32.mrb[3].mxu1 }
 0x1de   :  { %v231_v34 = vpack.c.bf16 %v230_v32, %v230_v32 }
 0x1e0   :  { %456 = vmatmul.mubr.bf16.vlgmr.msra.gmra.mrb[4].mxu0 %v231_v34 }
 0x2b3   :  { %v318_v38 = vpop.f32.mrb[4].mxu0 }
 0x2b4   :  { %v319_v39 = vadd.f32 %v382_v37, %v318_v38  ;;  %v457_v40 = vpop.f32.mrb[5].mxu0 }
 0x2b5   :  { %v321_v41 = vpop.f32.mrb[6].mxu0 }
 0x2b6   :  { %v458_v42 = vpop.f32.mrb[7].mxu0  ;;  %v327_v43 = vsel %vm326_vm2, %v319_v39, -inf  ;;  %v392_v44 = vpack.c.bf16 %v319_v39, %v319_v39 }
 0x2b7   :  { %328 = vmax.xlane.f32.xlu0 %v327_v43 }
 0x2b8   :  { %345 = vrot.lane.b32.xlu1 %v392_v44, %s566_s19 }
 0x32a   :  { %v346_v45 = vpop.permute.xlu1 %345 }
 0x32b   :  { %349 = vst.msk [vmem:[%s674_s4] sm:$0xf] %vm348_vm3, %v346_v45 }
 0x344   :  { %v329_v46 = vpop.xlane.xlu0 %328 }
 0x345   :  { %v330_v47 = vsub.f32 %v319_v39, %v329_v46 }
 0x347   :  { %v331_v48 = vmul.f32 1.442695, %v330_v47 }
 0x349   :  { %484 = vpow2.f32 %v331_v48 }
 0x353   :  { %v485_v49 = vpop.eup %484 }
 0x354   :  { %v333_v50 = vsel %vm326_vm2, %v485_v49, 0.0 }
 0x355   :  { %334 = vadd.xlane.f32.xlu0 %v333_v50 }
 0x3e2   :  { %v335_v51 = vpop.xlane.xlu0 %334 }
 0x3e3   :  { %486 = vrcp.f32 %v335_v51 }
 0x3ed   :  { %v487_v52 = vpop.eup %486 }
 0x3ee   :  { %v337_v53 = vmul.f32 %v487_v52, %v333_v50 }
 0x3f0   :  { %v338_v54 = vpack.c.bf16 %v337_v53, %v337_v53 }
 0x3f2   :  { %340 = vst.msk [vmem:[#allocation7] sm:$0xf] %vm339_vm4, %v338_v54 }
 0x3f3   :  { %543 = shalt.err (!%p540_p6)
}
 0x3f4   :  { %s544_s25 = scalar_lea.hbm %s673_s3, 64 }
 0x3f5   :  { %p545_p7 = scmp.ne.s32.totalorder %s673_s3, %s544_s25  ;;  %p548_p8 = scmp.lt.u32.totalorder %s544_s25, %s673_s3 }
 0x3f7   :  { %p550_p9 = pnand %p548_p8, %p545_p7 }
 0x3f9   :  { %553 = shalt.err (!%p550_p9)
}
 0x3fa   :  { %359 = dma.vmem_to_hbm [thread:$0]  %s357_s22, 64, %s673_s3, [#allocation4]  }
 0x3fb   :  { %558 = dma.done.wait [#allocation4], 64  }
 0x3fc   :  { %559 = vsyncadd [#allocation4], 4294967232 }
 0x3fd   :  { %367 = vsyncpa [#allocation3], 1 }
 0x3fe   :  { %368 = vsyncpa [#allocation6], 1 }
 0x3ff   :  { %369 = vsyncpa [#allocation4], 1 }

</bundles_post_ra>
